<compile_context>
chip_gen: v6e
topology: v6e:2x2x1
jax: 0.10.0
libtpu: 0.0.40
codegen_flags: <defaults>
</compile_context>

<pallas_src>
import functools

import jax
import jax.numpy as jnp
from jax.experimental import pallas as pl
from jax.experimental.pallas import tpu as pltpu

_LANE = 128


def _round_up(x, m):
    return ((x + m - 1) // m) * m


@functools.lru_cache(maxsize=None)
def _hw_vmem_budget_bytes():
    """~75% of physical per-core VMEM; conservative fallback = v7x (64 MiB)."""
    try:
        cap = int(pltpu.get_tpu_info().vmem_capacity_bytes)
    except Exception:
        cap = 64 * 1024 * 1024
    return (cap * 3) // 4


def _pick_tiling(n_pad, d_pad, vmem_budget):
    """Pick (tm, tk); both divide n_pad. tk == n_pad means K is fully collapsed."""
    elt = 4  # adj / features streamed in f32
    # VMEM that does not scale with the adj tile (counted double-buffered).
    resident = (2 * n_pad * d_pad * elt        # resident features block
                + 2 * d_pad * d_pad * elt      # w1
                + 4 * d_pad * elt)             # b1 + w2 rows

    def fits(tm, tk, nbuf):
        need = (resident
                + nbuf * tm * tk * elt         # adj tile buffers
                + tm * d_pad * 4               # f32 accumulator scratch
                + 2 * tm * _LANE * 4           # lane-dense output buffers
                + (2 << 20))                   # slack for Mosaic internals
        return need <= vmem_budget

    tile_cands = [t for t in range(_LANE, n_pad + 1, _LANE) if n_pad % t == 0]
    tm_cands = [t for t in tile_cands if t <= 1024] or [min(tile_cands)]

    # 1) Collapse K entirely when it fits: adj streamed exactly once, no partial
    #    sums.  Prefer grid_m >= 2 so the "parallel" row axis can shard across
    #    TensorCores (megacore / v7x).
    full_k = [tm for tm in tm_cands if fits(tm, n_pad, 2)]
    if full_k:
        multi_row = [tm for tm in full_k if n_pad // tm >= 2]
        return (max(multi_row) if multi_row else max(full_k)), n_pad

    # 2) Otherwise tile K: biggest row tile <= 512 and the biggest K tile that
    #    fits with a triple-buffered adj stream.
    tm = max([t for t in tm_cands if t <= 512] or [min(tm_cands)])
    fitting = [tk for tk in tile_cands if fits(tm, tk, 3)]
    tk = max(fitting) if fitting else _LANE
    return tm, tk


def _gnn_kernel(adj_ref, feat_ref, w1_ref, b1_ref, w2_ref, b2_ref, out_ref,
                acc_ref, *, tk):
    k = pl.program_id(1)

    @pl.when(k == 0)
    def _init():
        acc_ref[...] = jnp.zeros_like(acc_ref)

    # Graph-aggregation partial sum against the K-window of the *resident*
    # features block (features are never re-streamed from HBM).
    start = pl.multiple_of(k * tk, tk)
    acc_ref[...] += jnp.dot(adj_ref[...], feat_ref[pl.ds(start, tk), :],
                            preferred_element_type=jnp.float32)

    @pl.when(k == pl.num_programs(1) - 1)
    def _epilogue():
        # fc1 + bias + ReLU (runs once per row tile).
        hidden = jnp.dot(acc_ref[...], w1_ref[...],
                         preferred_element_type=jnp.float32) + b1_ref[...]
        hidden = jnp.maximum(hidden, 0.0)
        # fc2 as a VPU multiply + lane reduction (avoids a width-1 MXU matmul).
        scores = jnp.sum(hidden * w2_ref[...], axis=-1, keepdims=True) + b2_ref[0]
        # Lane-dense (tm, 128) store; the wrapper reads column 0.
        out_ref[...] = jnp.broadcast_to(scores, out_ref.shape).astype(out_ref.dtype)


@functools.partial(jax.jit, static_argnames=("vmem_budget",))
def simple_gnn_forward(features, adj, w1, b1, w2, b2, *, vmem_budget=None):
    """Fused SimpleGNN forward. w1:(D,H), b1:(H,), w2:(H,1), b2:(1,). Returns (N,)."""
    n, d = features.shape
    h = w1.shape[1]

    n_pad = _round_up(max(n, _LANE), _LANE)   # pad only to 128, never to tiles
    d_pad = _round_up(max(d, _LANE), _LANE)
    h_pad = _round_up(max(h, _LANE), _LANE)

    hw_budget = _hw_vmem_budget_bytes()
    budget = hw_budget if vmem_budget is None else min(int(vmem_budget), hw_budget)
    tm, tk = _pick_tiling(n_pad, d_pad, budget)
    grid_m, grid_k = n_pad // tm, n_pad // tk

    # adj streamed in native f32 (no bf16 pre-pass copy); only padded when N is
    # not already a multiple of 128.
    adj_in = adj.astype(jnp.float32)
    if n_pad != n:
        adj_in = jnp.pad(adj_in, ((0, n_pad - n), (0, n_pad - n)))
    # Small operands: zero-pad so padded rows/cols contribute exact zeros.
    feat_p = jnp.zeros((n_pad, d_pad), jnp.float32).at[:n, :d].set(
        features.astype(jnp.float32))
    w1_p = jnp.zeros((d_pad, h_pad), jnp.float32).at[:d, :h].set(w1)
    b1_p = jnp.zeros((1, h_pad), jnp.float32).at[0, :h].set(b1.reshape(-1))
    w2_p = jnp.zeros((1, h_pad), jnp.float32).at[0, :h].set(w2.reshape(-1))
    b2_s = b2.reshape(1).astype(jnp.float32)

    adj_map = lambda i, k: (i, k)
    if grid_k > 1:
        try:   # triple-buffer the streamed operand when the K axis is tiled
            adj_spec = pl.BlockSpec((tm, tk), adj_map, pipeline_mode=pl.Buffered(3))
        except Exception:  # fall back if pipeline_mode/Buffered unavailable
            adj_spec = pl.BlockSpec((tm, tk), adj_map)
    else:
        adj_spec = pl.BlockSpec((tm, tk), adj_map)

    flops = 2 * n_pad * n_pad * d_pad + 2 * n_pad * d_pad * h_pad + 2 * n_pad * h_pad
    bytes_accessed = (n_pad * n_pad * 4           # adj streamed exactly once (f32)
                      + n_pad * d_pad * 4         # resident features, fetched once
                      + (d_pad * h_pad + 2 * h_pad + 1) * 4
                      + n_pad * _LANE * 4)        # lane-dense output

    out = pl.pallas_call(
        functools.partial(_gnn_kernel, tk=tk),
        out_shape=jax.ShapeDtypeStruct((n_pad, _LANE), jnp.float32),
        grid=(grid_m, grid_k),
        in_specs=[
            adj_spec,                                              # adj (streamed)
            pl.BlockSpec((n_pad, d_pad), lambda i, k: (0, 0)),     # features (resident)
            pl.BlockSpec((d_pad, h_pad), lambda i, k: (0, 0)),     # w1 (resident)
            pl.BlockSpec((1, h_pad), lambda i, k: (0, 0)),         # b1 (resident)
            pl.BlockSpec((1, h_pad), lambda i, k: (0, 0)),         # w2 row (resident)
            pl.BlockSpec(memory_space=pltpu.MemorySpace.SMEM),     # b2 scalar
        ],
        out_specs=pl.BlockSpec((tm, _LANE), lambda i, k: (i, 0)),
        scratch_shapes=[pltpu.VMEM((tm, d_pad), jnp.float32)],
        compiler_params=pltpu.CompilerParams(
            dimension_semantics=("parallel", "arbitrary"),
            vmem_limit_bytes=hw_budget,
        ),
        cost_estimate=pl.CostEstimate(
            flops=flops, transcendentals=0, bytes_accessed=bytes_accessed),
    )(adj_in, feat_p, w1_p, b1_p, w2_p, b2_s)

    # torch's x.squeeze() on (N, 1) -> (N,)
    return out[:n, 0]


def _init_params(key, input_dim, hidden_dim):
    """Deterministic init mirroring nn.Linear's uniform(-1/sqrt(fan_in), +1/sqrt(fan_in))."""
    k1, k2, k3, k4 = jax.random.split(key, 4)
    bound1 = 1.0 / jnp.sqrt(input_dim)
    bound2 = 1.0 / jnp.sqrt(hidden_dim)
    # Weights stored pre-transposed to (in, out) so the kernel does x @ w.
    w1 = jax.random.uniform(k1, (input_dim, hidden_dim), jnp.float32, -bound1, bound1)
    b1 = jax.random.uniform(k2, (hidden_dim,), jnp.float32, -bound1, bound1)
    w2 = jax.random.uniform(k3, (hidden_dim, 1), jnp.float32, -bound2, bound2)
    b2 = jax.random.uniform(k4, (1,), jnp.float32, -bound2, bound2)
    return w1, b1, w2, b2


def _reference(features, adj, w1, b1, w2, b2):
    """Pure-JAX f32 reference of the PyTorch forward."""
    hp = jax.lax.Precision.HIGHEST
    x = jnp.dot(adj, features, precision=hp)
    x = jnp.maximum(jnp.dot(x, w1, precision=hp) + b1, 0.0)
    return (jnp.dot(x, w2, precision=hp) + b2.reshape(1, 1)).reshape(-1)


if __name__ == "__main__":
    # Small shapes consistent with the module: N sentences, input_dim feature size.
    N, INPUT_DIM, HIDDEN_DIM = 8, 16, 32

    key = jax.random.PRNGKey(0)
    k_feat, k_adj, k_params = jax.random.split(key, 3)

    features = jax.random.normal(k_feat, (N, INPUT_DIM), jnp.float32)
    adj_raw = jax.random.uniform(k_adj, (N, N), jnp.float32)
    adj = 0.5 * (adj_raw + adj_raw.T)

    w1, b1, w2, b2 = _init_params(k_params, INPUT_DIM, HIDDEN_DIM)

    out = jax.block_until_ready(simple_gnn_forward(features, adj, w1, b1, w2, b2))
    ref = _reference(features, adj, w1, b1, w2, b2)
    assert out.shape == (N,)
    assert jnp.allclose(out, ref, atol=1e-2, rtol=1e-2), (out, ref)

    # Multi-row-tile case: N is a multiple of 128 (no adj pad copy), K collapses
    # to a single resident reduction block, grid_m > 1 exercises row tiling.
    N2 = 640
    kf2, ka2 = jax.random.split(jax.random.PRNGKey(1))
    feats2 = jax.random.normal(kf2, (N2, INPUT_DIM), jnp.float32)
    adj2_raw = jax.random.uniform(ka2, (N2, N2), jnp.float32)
    adj2 = 0.5 * (adj2_raw + adj2_raw.T)

    out2 = jax.block_until_ready(simple_gnn_forward(feats2, adj2, w1, b1, w2, b2))
    ref2 = _reference(feats2, adj2, w1, b1, w2, b2)
    assert out2.shape == (N2,)
    assert jnp.allclose(out2, ref2, atol=3e-1, rtol=5e-2), float(
        jnp.max(jnp.abs(out2 - ref2)))

    # Force a small VMEM budget to exercise the tiled-K accumulator path
    # (grid_k > 1, triple-buffered adj stream) on the same data.
    out3 = jax.block_until_ready(
        simple_gnn_forward(feats2, adj2, w1, b1, w2, b2, vmem_budget=3_400_000))
    assert out3.shape == (N2,)
    assert jnp.allclose(out3, ref2, atol=3e-1, rtol=5e-2), float(
        jnp.max(jnp.abs(out3 - ref2)))

    print("KERNEL_OK")
</pallas_src>

<mosaic_0001>
module attributes {stable_mosaic.version = 11 : i64} {
  func.func @_gnn_kernel(%arg0: i32, %arg1: i32, %arg2: memref<128x128xf32, #tpu.memory_space<vmem>>, %arg3: memref<128x128xf32, #tpu.memory_space<vmem>>, %arg4: memref<128x128xf32, #tpu.memory_space<vmem>>, %arg5: memref<1x128xf32, #tpu.memory_space<vmem>>, %arg6: memref<1x128xf32, #tpu.memory_space<vmem>>, %arg7: memref<1xf32, #tpu.memory_space<smem>>, %arg8: memref<128x128xf32, #tpu.memory_space<vmem>>, %arg9: memref<128x128xf32, #tpu.memory_space<vmem>>) attributes {dimension_semantics = [#tpu.dimension_semantics<parallel>, #tpu.dimension_semantics<arbitrary>], iteration_bounds = array<i64: 1, 1>, scalar_prefetch = 0 : i64, scratch_operands = 1 : i64, tpu.core_type = #tpu.core_type<tc>, window_params = [{transform_indices = @transform_0, window_bounds = array<i64: 128, 128>}, {pipeline_mode = #tpu.pipeline_mode<synchronous>, transform_indices = @transform_1, window_bounds = array<i64: 128, 128>}, {pipeline_mode = #tpu.pipeline_mode<synchronous>, transform_indices = @transform_2, window_bounds = array<i64: 128, 128>}, {pipeline_mode = #tpu.pipeline_mode<synchronous>, transform_indices = @transform_3, window_bounds = array<i64: 1, 128>}, {pipeline_mode = #tpu.pipeline_mode<synchronous>, transform_indices = @transform_4, window_bounds = array<i64: 1, 128>}, {transform_indices = @transform_5, window_bounds = array<i64: 1>}, {transform_indices = @transform_6, window_bounds = array<i64: 128, 128>}]} {
    %c0_i32 = arith.constant 0 : i32
    %0 = arith.cmpi eq, %arg1, %c0_i32 : i32
    %1 = arith.extui %0 : i1 to i32
    %c0_i32_0 = arith.constant 0 : i32
    %2 = arith.cmpi ne, %1, %c0_i32_0 : i32
    scf.if %2 {
      %cst_9 = arith.constant 0.000000e+00 : f32
      %15 = vector.broadcast %cst_9 : f32 to vector<128x128xf32>
      %c0_10 = arith.constant 0 : index
      %c0_11 = arith.constant 0 : index
      %16 = vector.load %arg9[%c0_10, %c0_11] : memref<128x128xf32, #tpu.memory_space<vmem>>, vector<128x128xf32>
      tpu.vector_store %arg9[%c0_10, %c0_11], %15 {strides = array<i32>} : memref<128x128xf32, #tpu.memory_space<vmem>>, vector<128x128xf32>,
    } else {
    }
    %c128_i32 = arith.constant 128 : i32
    %3 = arith.muli %arg1, %c128_i32 : i32
    %4 = tpu.assume_multiple %3, 128 : i32
    %c0 = arith.constant 0 : index
    %c0_1 = arith.constant 0 : index
    %5 = vector.load %arg9[%c0, %c0_1] : memref<128x128xf32, #tpu.memory_space<vmem>>, vector<128x128xf32>
    %c0_2 = arith.constant 0 : index
    %c0_3 = arith.constant 0 : index
    %6 = vector.load %arg2[%c0_2, %c0_3] : memref<128x128xf32, #tpu.memory_space<vmem>>, vector<128x128xf32>
    %7 = arith.index_cast %4 : i32 to index
    %c0_4 = arith.constant 0 : index
    %8 = vector.load %arg3[%7, %c0_4] : memref<128x128xf32, #tpu.memory_space<vmem>>, vector<128x128xf32>
    %cst = arith.constant dense<0.000000e+00> : vector<128x128xf32>
    %9 = tpu.matmul %6, %8, %cst {dimension_numbers = #tpu.dot_dimension_numbers<[1], [0], [0], [1], [0, 0, 1, 1], [], []>} : vector<128x128xf32>, vector<128x128xf32>, vector<128x128xf32> -> vector<128x128xf32>
    %10 = arith.addf %5, %9 : vector<128x128xf32>
    %c0_5 = arith.constant 0 : index
    %c0_6 = arith.constant 0 : index
    %11 = vector.load %arg9[%c0_5, %c0_6] : memref<128x128xf32, #tpu.memory_space<vmem>>, vector<128x128xf32>
    tpu.vector_store %arg9[%c0_5, %c0_6], %10 {strides = array<i32>} : memref<128x128xf32, #tpu.memory_space<vmem>>, vector<128x128xf32>,
    %c0_i32_7 = arith.constant 0 : i32
    %12 = arith.cmpi eq, %arg1, %c0_i32_7 : i32
    %13 = arith.extui %12 : i1 to i32
    %c0_i32_8 = arith.constant 0 : i32
    %14 = arith.cmpi ne, %13, %c0_i32_8 : i32
    scf.if %14 {
      %c0_9 = arith.constant 0 : index
      %c0_10 = arith.constant 0 : index
      %15 = vector.load %arg9[%c0_9, %c0_10] : memref<128x128xf32, #tpu.memory_space<vmem>>, vector<128x128xf32>
      %c0_11 = arith.constant 0 : index
      %c0_12 = arith.constant 0 : index
      %16 = vector.load %arg4[%c0_11, %c0_12] : memref<128x128xf32, #tpu.memory_space<vmem>>, vector<128x128xf32>
      %cst_13 = arith.constant dense<0.000000e+00> : vector<128x128xf32>
      %17 = tpu.matmul %15, %16, %cst_13 {dimension_numbers = #tpu.dot_dimension_numbers<[1], [0], [0], [1], [0, 0, 1, 1], [], []>} : vector<128x128xf32>, vector<128x128xf32>, vector<128x128xf32> -> vector<128x128xf32>
      %c0_14 = arith.constant 0 : index
      %c0_15 = arith.constant 0 : index
      %18 = vector.load %arg5[%c0_14, %c0_15] : memref<1x128xf32, #tpu.memory_space<vmem>>, vector<1x128xf32>
      %19 = vector.broadcast %18 : vector<1x128xf32> to vector<128x128xf32>
      %20 = arith.addf %17, %19 : vector<128x128xf32>
      %cst_16 = arith.constant 0.000000e+00 : f32
      %21 = vector.broadcast %cst_16 : f32 to vector<128x128xf32>
      %22 = arith.maximumf %20, %21 : vector<128x128xf32>
      %c0_17 = arith.constant 0 : index
      %c0_18 = arith.constant 0 : index
      %23 = vector.load %arg6[%c0_17, %c0_18] : memref<1x128xf32, #tpu.memory_space<vmem>>, vector<1x128xf32>
      %24 = vector.broadcast %23 : vector<1x128xf32> to vector<128x128xf32>
      %25 = arith.mulf %22, %24 : vector<128x128xf32>
      %cst_19 = arith.constant dense<0.000000e+00> : vector<128xf32>
      %26 = vector.multi_reduction <add>, %25, %cst_19 [1] : vector<128x128xf32> to vector<128xf32>
      %27 = vector.shape_cast %26 : vector<128xf32> to vector<128x1xf32>
      %c0_20 = arith.constant 0 : index
      %28 = memref.load %arg7[%c0_20] : memref<1xf32, #tpu.memory_space<smem>>
      %29 = vector.broadcast %28 : f32 to vector<128x1xf32>
      %30 = arith.addf %27, %29 : vector<128x1xf32>
      %31 = vector.shape_cast %30 : vector<128x1xf32> to vector<128x1xf32>
      %32 = vector.broadcast %31 : vector<128x1xf32> to vector<128x128xf32>
      %c0_21 = arith.constant 0 : index
      %c0_22 = arith.constant 0 : index
      %33 = vector.load %arg8[%c0_21, %c0_22] : memref<128x128xf32, #tpu.memory_space<vmem>>, vector<128x128xf32>
      tpu.vector_store %arg8[%c0_21, %c0_22], %32 {strides = array<i32>} : memref<128x128xf32, #tpu.memory_space<vmem>>, vector<128x128xf32>,
    } else {
    }
    return
  }
  func.func @transform_0(%arg0: i32, %arg1: i32) -> (i32, i32) {
    %c0_i32 = arith.constant 0 : i32
    return %arg0, %arg1 : i32, i32
  }
  func.func @transform_1(%arg0: i32, %arg1: i32) -> (i32, i32) {
    %c0_i32 = arith.constant 0 : i32
    %c0_i32_0 = arith.constant 0 : i32
    %c0_i32_1 = arith.constant 0 : i32
    return %c0_i32, %c0_i32_0 : i32, i32
  }
  func.func @transform_2(%arg0: i32, %arg1: i32) -> (i32, i32) {
    %c0_i32 = arith.constant 0 : i32
    %c0_i32_0 = arith.constant 0 : i32
    %c0_i32_1 = arith.constant 0 : i32
    return %c0_i32, %c0_i32_0 : i32, i32
  }
  func.func @transform_3(%arg0: i32, %arg1: i32) -> (i32, i32) {
    %c0_i32 = arith.constant 0 : i32
    %c0_i32_0 = arith.constant 0 : i32
    %c0_i32_1 = arith.constant 0 : i32
    return %c0_i32, %c0_i32_0 : i32, i32
  }
  func.func @transform_4(%arg0: i32, %arg1: i32) -> (i32, i32) {
    %c0_i32 = arith.constant 0 : i32
    %c0_i32_0 = arith.constant 0 : i32
    %c0_i32_1 = arith.constant 0 : i32
    return %c0_i32, %c0_i32_0 : i32, i32
  }
  func.func @transform_5(%arg0: i32, %arg1: i32) -> i32 {
    %c0_i32 = arith.constant 0 : i32
    %c0_i32_0 = arith.constant 0 : i32
    return %c0_i32 : i32
  }
  func.func @transform_6(%arg0: i32, %arg1: i32) -> (i32, i32) {
    %c0_i32 = arith.constant 0 : i32
    %c0_i32_0 = arith.constant 0 : i32
    return %arg0, %c0_i32 : i32, i32
  }
}

</mosaic_0001>

<bundles_post_ra>
// kernel: simple_gnn_forward.1
= control target key start
LH: loop header
LB: loop body
LE: loop exit
PB: predicated region body
PF: predicated region fallthrough
CT: control target
= control target key end

     0   :  { %s1017_s1 = inlined_call_operand.vmem [shape: f32[128,128], index: 1, kind: input, shape index: {}]   ;;  %s1018_s0 = inlined_call_operand.vmem [shape: f32[128,128], index: 0, kind: input, shape index: {}]   ;;  %s1019_s2 = inlined_call_operand.vmem [shape: f32[128,128], index: 2, kind: input, shape index: {}]   ;;  %s1020_s3 = inlined_call_operand.vmem [shape: f32[1,128], index: 3, kind: input, shape index: {}]   ;;  %s1021_s4 = inlined_call_operand.vmem [shape: f32[1,128], index: 4, kind: input, shape index: {}]   ;;  %s1022_s5 = inlined_call_operand.<no memory space> [shape: f32[1], index: 5, kind: input, shape index: {}]   ;;  %s1023_s6 = inlined_call_operand.vmem [shape: f32[128,128], index: 6, kind: output, shape index: {}]  }
   0x1   :  { %v93_v0 = vld [vmem:[%s1017_s1 + $0x78] sm:$0xff]  ;;  %v92_v1 = vld [vmem:[%s1017_s1 + $0x70] sm:$0xff]  ;;  %v91_v2 = vld [vmem:[%s1017_s1 + $0x68] sm:$0xff] }
   0x2   :  { %633 = vmatprep.subr.mxu0 %v93_v0  ;;  %v90_v3 = vld [vmem:[%s1017_s1 + $0x60] sm:$0xff]  ;;  %v89_v5 = vld [vmem:[%s1017_s1 + $0x58] sm:$0xff]  ;;  %v88_v6 = vld [vmem:[%s1017_s1 + $0x50] sm:$0xff] }
   0x3   :  { %634 = vmatpush3.msra.mxu0 %v93_v0  ;;  %v61_v4 = vld [vmem:[%s1018_s0] sm:$0xff]  ;;  %v87_v7 = vld [vmem:[%s1017_s1 + $0x48] sm:$0xff]  ;;  %v305_v8 = vld [vmem:[%s1019_s2 + $0x78] sm:$0xff] }
   0x4   :  { %635 = vmatprep.subr.mxu0 %v92_v1  ;;  %665 = vmatprep.mubr.f32.mxu0 %v61_v4  ;;  %v304_v9 = vld [vmem:[%s1019_s2 + $0x70] sm:$0xff]  ;;  %v86_v10 = vld [vmem:[%s1017_s1 + $0x40] sm:$0xff]  ;;  %v303_v11 = vld [vmem:[%s1019_s2 + $0x68] sm:$0xff] }
   0x5   :  { %636 = vmatpush3.msra.mxu0 %v92_v1  ;;  %689 = vmatprep.subr.mxu1 %v305_v8  ;;  %v85_v12 = vld [vmem:[%s1017_s1 + $0x38] sm:$0xff]  ;;  %v302_v13 = vld [vmem:[%s1019_s2 + $0x60] sm:$0xff]  ;;  %v84_v14 = vld [vmem:[%s1017_s1 + $0x30] sm:$0xff] }
   0x6   :  { %637 = vmatprep.subr.mxu0 %v91_v2  ;;  %690 = vmatpush3.msra.mxu1 %v305_v8  ;;  %v301_v15 = vld [vmem:[%s1019_s2 + $0x58] sm:$0xff]  ;;  %v83_v16 = vld [vmem:[%s1017_s1 + $0x28] sm:$0xff]  ;;  %v300_v17 = vld [vmem:[%s1019_s2 + $0x50] sm:$0xff] }
   0x7   :  { %638 = vmatpush3.msra.mxu0 %v91_v2  ;;  %691 = vmatprep.subr.mxu1 %v304_v9  ;;  %v82_v18 = vld [vmem:[%s1017_s1 + $0x20] sm:$0xff]  ;;  %v299_v19 = vld [vmem:[%s1019_s2 + $0x48] sm:$0xff]  ;;  %v81_v20 = vld [vmem:[%s1017_s1 + $0x18] sm:$0xff] }
   0x8   :  { %639 = vmatprep.subr.mxu0 %v90_v3  ;;  %692 = vmatpush3.msra.mxu1 %v304_v9  ;;  %v298_v21 = vld [vmem:[%s1019_s2 + $0x40] sm:$0xff]  ;;  %v80_v22 = vld [vmem:[%s1017_s1 + $0x10] sm:$0xff]  ;;  %v297_v23 = vld [vmem:[%s1019_s2 + $0x38] sm:$0xff] }
   0x9   :  { %640 = vmatpush3.msra.mxu0 %v90_v3  ;;  %693 = vmatprep.subr.mxu1 %v303_v11  ;;  %v79_v24 = vld [vmem:[%s1017_s1 + $0x8] sm:$0xff]  ;;  %v296_v25 = vld [vmem:[%s1019_s2 + $0x30] sm:$0xff]  ;;  %v78_v26 = vld [vmem:[%s1017_s1] sm:$0xff] }
   0xa   :  { %641 = vmatprep.subr.mxu0 %v89_v5  ;;  %694 = vmatpush3.msra.mxu1 %v303_v11  ;;  %v295_v27 = vld [vmem:[%s1019_s2 + $0x28] sm:$0xff]  ;;  %v294_v29 = vld [vmem:[%s1019_s2 + $0x20] sm:$0xff]  ;;  %v63_v30 = vld [vmem:[%s1018_s0 + $0x10] sm:$0xff] }
   0xb   :  { %642 = vmatpush3.msra.mxu0 %v89_v5  ;;  %695 = vmatprep.subr.mxu1 %v302_v13  ;;  %v62_v28 = vld [vmem:[%s1018_s0 + $0x8] sm:$0xff]  ;;  %v293_v31 = vld [vmem:[%s1019_s2 + $0x18] sm:$0xff]  ;;  %v292_v33 = vld [vmem:[%s1019_s2 + $0x10] sm:$0xff] }
   0xc   :  { %643 = vmatprep.subr.mxu0 %v88_v6  ;;  %696 = vmatpush3.msra.mxu1 %v302_v13  ;;  %v64_v32 = vld [vmem:[%s1018_s0 + $0x18] sm:$0xff]  ;;  %v65_v34 = vld [vmem:[%s1018_s0 + $0x20] sm:$0xff]  ;;  %v66_v35 = vld [vmem:[%s1018_s0 + $0x28] sm:$0xff] }
   0xd   :  { %644 = vmatpush3.msra.mxu0 %v88_v6  ;;  %697 = vmatprep.subr.mxu1 %v301_v15  ;;  %v67_v36 = vld [vmem:[%s1018_s0 + $0x30] sm:$0xff]  ;;  %v68_v37 = vld [vmem:[%s1018_s0 + $0x38] sm:$0xff]  ;;  %v69_v38 = vld [vmem:[%s1018_s0 + $0x40] sm:$0xff] }
   0xe   :  { %645 = vmatprep.subr.mxu0 %v87_v7  ;;  %698 = vmatpush3.msra.mxu1 %v301_v15  ;;  %v70_v39 = vld [vmem:[%s1018_s0 + $0x48] sm:$0xff]  ;;  %v71_v40 = vld [vmem:[%s1018_s0 + $0x50] sm:$0xff]  ;;  %v72_v41 = vld [vmem:[%s1018_s0 + $0x58] sm:$0xff] }
   0xf   :  { %646 = vmatpush3.msra.mxu0 %v87_v7  ;;  %699 = vmatprep.subr.mxu1 %v300_v17  ;;  %v73_v42 = vld [vmem:[%s1018_s0 + $0x60] sm:$0xff]  ;;  %v74_v43 = vld [vmem:[%s1018_s0 + $0x68] sm:$0xff]  ;;  %v75_v44 = vld [vmem:[%s1018_s0 + $0x70] sm:$0xff] }
  0x10   :  { %647 = vmatprep.subr.mxu0 %v86_v10  ;;  %700 = vmatpush3.msra.mxu1 %v300_v17  ;;  %v76_v45 = vld [vmem:[%s1018_s0 + $0x78] sm:$0xff]  ;;  %v291_v46 = vld [vmem:[%s1019_s2 + $0x8] sm:$0xff]  ;;  %v290_v47 = vld [vmem:[%s1019_s2] sm:$0xff] }
  0x11   :  { %648 = vmatpush3.msra.mxu0 %v86_v10  ;;  %701 = vmatprep.subr.mxu1 %v299_v19  ;;  %v927_v0 = vld [vmem:[%s1020_s3] ss:$0 sm:$0xff] }
  0x12   :  { %649 = vmatprep.subr.mxu0 %v85_v12  ;;  %702 = vmatpush3.msra.mxu1 %v299_v19  ;;  %v933_v4 = vld [vmem:[%s1021_s4] ss:$0 sm:$0xff] }
  0x13   :  { %650 = vmatpush3.msra.mxu0 %v85_v12  ;;  %703 = vmatprep.subr.mxu1 %v298_v21 }
  0x14   :  { %651 = vmatprep.subr.mxu0 %v84_v14  ;;  %704 = vmatpush3.msra.mxu1 %v298_v21 }
  0x15   :  { %652 = vmatpush3.msra.mxu0 %v84_v14  ;;  %705 = vmatprep.subr.mxu1 %v297_v23 }
  0x16   :  { %653 = vmatprep.subr.mxu0 %v83_v16  ;;  %706 = vmatpush3.msra.mxu1 %v297_v23 }
  0x17   :  { %654 = vmatpush3.msra.mxu0 %v83_v16  ;;  %707 = vmatprep.subr.mxu1 %v296_v25 }
  0x18   :  { %655 = vmatprep.subr.mxu0 %v82_v18  ;;  %708 = vmatpush3.msra.mxu1 %v296_v25 }
  0x19   :  { %656 = vmatpush3.msra.mxu0 %v82_v18  ;;  %709 = vmatprep.subr.mxu1 %v295_v27 }
  0x1a   :  { %657 = vmatprep.subr.mxu0 %v81_v20  ;;  %710 = vmatpush3.msra.mxu1 %v295_v27 }
  0x1b   :  { %658 = vmatpush3.msra.mxu0 %v81_v20  ;;  %711 = vmatprep.subr.mxu1 %v294_v29 }
  0x1c   :  { %659 = vmatprep.subr.mxu0 %v80_v22  ;;  %712 = vmatpush3.msra.mxu1 %v294_v29 }
  0x1d   :  { %660 = vmatpush3.msra.mxu0 %v80_v22  ;;  %713 = vmatprep.subr.mxu1 %v293_v31 }
  0x1e   :  { %661 = vmatprep.subr.mxu0 %v79_v24  ;;  %714 = vmatpush3.msra.mxu1 %v293_v31 }
  0x1f   :  { %662 = vmatpush3.msra.mxu0 %v79_v24  ;;  %715 = vmatprep.subr.mxu1 %v292_v33 }
  0x20   :  { %663 = vmatprep.subr.mxu0 %v78_v26  ;;  %716 = vmatpush3.msra.mxu1 %v292_v33 }
  0x21   :  { %664 = vmatpush3.msra.mxu0 %v78_v26  ;;  %717 = vmatprep.subr.mxu1 %v291_v46 }
  0x22   :  { %666 = vmatmul.mubr.f32.vlgmr.msra.gmra.mxu0 %v62_v28  ;;  %718 = vmatpush3.msra.mxu1 %v291_v46 }
  0x23   :  { %668 = vmatprep.mubr.f32.mxu0 %v63_v30  ;;  %719 = vmatprep.subr.mxu1 %v290_v47 }
  0x24   :  { %720 = vmatpush3.msra.mxu1 %v290_v47 }
  0x26   :  { %669 = vmatmul.mubr.f32.gmra.mxu0 %v64_v32 }
  0x27   :  { %671 = vmatprep.mubr.f32.mxu0 %v65_v34 }
  0x2a   :  { %672 = vmatmul.mubr.f32.gmra.mxu0 %v66_v35 }
  0x2b   :  { %674 = vmatprep.mubr.f32.mxu0 %v67_v36 }
  0x2e   :  { %675 = vmatmul.mubr.f32.gmra.mxu0 %v68_v37 }
  0x2f   :  { %677 = vmatprep.mubr.f32.mxu0 %v69_v38 }
  0x32   :  { %678 = vmatmul.mubr.f32.gmra.mxu0 %v70_v39 }
  0x33   :  { %680 = vmatprep.mubr.f32.mxu0 %v71_v40 }
  0x36   :  { %681 = vmatmul.mubr.f32.gmra.mxu0 %v72_v41 }
  0x37   :  { %683 = vmatprep.mubr.f32.mxu0 %v73_v42 }
  0x3a   :  { %684 = vmatmul.mubr.f32.gmra.mxu0 %v74_v43 }
  0x3b   :  { %686 = vmatprep.mubr.f32.mxu0 %v75_v44 }
  0x3e   :  { %687 = vmatmul.mubr.f32.gmra.mxu0 %v76_v45 }
  0xe2   :  { %v667_v48 = vpop.f32.mrf.mxu0 }
  0xe4   :  { %v160_v49 = vpop.f32.mrf.mxu0 }
  0xe5   :  { %721 = vmatprep.mubr.f32.mxu1 %v160_v49 }
  0xe6   :  { %v670_v50 = vpop.f32.mrf.mxu0  ;;  %722 = vmatmul.mubr.f32.vlgmr.msra.gmra.mxu1 %v667_v48 }
  0xe8   :  { %v170_v51 = vpop.f32.mrf.mxu0 }
  0xe9   :  { %724 = vmatprep.mubr.f32.mxu1 %v170_v51 }
  0xea   :  { %v673_v52 = vpop.f32.mrf.mxu0  ;;  %725 = vmatmul.mubr.f32.gmra.mxu1 %v670_v50 }
  0xec   :  { %v180_v53 = vpop.f32.mrf.mxu0 }
  0xed   :  { %727 = vmatprep.mubr.f32.mxu1 %v180_v53 }
  0xee   :  { %v676_v54 = vpop.f32.mrf.mxu0  ;;  %728 = vmatmul.mubr.f32.gmra.mxu1 %v673_v52 }
  0xf0   :  { %v190_v55 = vpop.f32.mrf.mxu0 }
  0xf1   :  { %730 = vmatprep.mubr.f32.mxu1 %v190_v55 }
  0xf2   :  { %v679_v56 = vpop.f32.mrf.mxu0  ;;  %731 = vmatmul.mubr.f32.gmra.mxu1 %v676_v54 }
  0xf4   :  { %v200_v57 = vpop.f32.mrf.mxu0 }
  0xf5   :  { %733 = vmatprep.mubr.f32.mxu1 %v200_v57 }
  0xf6   :  { %v682_v58 = vpop.f32.mrf.mxu0  ;;  %734 = vmatmul.mubr.f32.gmra.mxu1 %v679_v56 }
  0xf8   :  { %v210_v59 = vpop.f32.mrf.mxu0 }
  0xf9   :  { %736 = vmatprep.mubr.f32.mxu1 %v210_v59 }
  0xfa   :  { %v685_v60 = vpop.f32.mrf.mxu0  ;;  %737 = vmatmul.mubr.f32.gmra.mxu1 %v682_v58 }
  0xfc   :  { %v220_v61 = vpop.f32.mrf.mxu0 }
  0xfd   :  { %739 = vmatprep.mubr.f32.mxu1 %v220_v61 }
  0xfe   :  { %v688_v62 = vpop.f32.mrf.mxu0  ;;  %740 = vmatmul.mubr.f32.gmra.mxu1 %v685_v60 }
 0x100   :  { %v230_v63 = vpop.f32.mrf.mxu0 }
 0x101   :  { %742 = vmatprep.mubr.f32.mxu1 %v230_v63 }
 0x102   :  { %743 = vmatmul.mubr.f32.gmra.mxu1 %v688_v62 }
 0x1a6   :  { %v723_v1 = vpop.f32.mrf.mxu1 }
 0x1a7   :  { %v385_v2 = vadd.f32 %v723_v1, %v927_v0 }
 0x1a8   :  { %v379_v3 = vpop.f32.mrf.mxu1 }
 0x1a9   :  { %v459_v5 = vmax.f32 %v385_v2, 0.0  ;;  %v380_v6 = vadd.f32 %v927_v0, %v379_v3  ;;  %v530_v3 = vstv %s1022_s5 }
 0x1aa   :  { %v726_v7 = vpop.f32.mrf.mxu1 }
 0x1ab   :  { %v458_v8 = vmax.f32 %v380_v6, 0.0  ;;  %v395_v9 = vadd.f32 %v726_v7, %v927_v0  ;;  %v482_v10 = vmul.f32 %v933_v4, %v459_v5 }
 0x1ac   :  { %v389_v11 = vpop.f32.mrf.mxu1 }
 0x1ad   :  { %v461_v12 = vmax.f32 %v395_v9, 0.0  ;;  %v390_v13 = vadd.f32 %v927_v0, %v389_v11  ;;  %499 = vadd.xlane.f32.xlu0 %v482_v10  ;;  %v481_v17 = vmul.f32 %v933_v4, %v458_v8 }
 0x1ae   :  { %v729_v14 = vpop.f32.mrf.mxu1 }
 0x1af   :  { %v460_v15 = vmax.f32 %v390_v13, 0.0  ;;  %v405_v16 = vadd.f32 %v729_v14, %v927_v0  ;;  %v484_v18 = vmul.f32 %v933_v4, %v461_v12 }
 0x1b0   :  { %v399_v19 = vpop.f32.mrf.mxu1 }
 0x1b1   :  { %v400_v20 = vadd.f32 %v927_v0, %v399_v19  ;;  %497 = vadd.xlane.f32.xlu0 %v481_v17  ;;  %503 = vadd.xlane.f32.xlu1 %v484_v18  ;;  %v463_v22 = vmax.f32 %v405_v16, 0.0  ;;  %v483_v25 = vmul.f32 %v933_v4, %v460_v15 }
 0x1b2   :  { %v732_v21 = vpop.f32.mrf.mxu1 }
 0x1b3   :  { %v462_v23 = vmax.f32 %v400_v20, 0.0  ;;  %v415_v24 = vadd.f32 %v732_v21, %v927_v0  ;;  %v486_v33 = vmul.f32 %v933_v4, %v463_v22 }
 0x1b4   :  { %v409_v26 = vpop.f32.mrf.mxu1 }
 0x1b5   :  { %v410_v27 = vadd.f32 %v927_v0, %v409_v26  ;;  %501 = vadd.xlane.f32.xlu1 %v483_v25  ;;  %v485_v28 = vmul.f32 %v933_v4, %v462_v23  ;;  %v465_v30 = vmax.f32 %v415_v24, 0.0 }
 0x1b6   :  { %v735_v29 = vpop.f32.mrf.mxu1 }
 0x1b7   :  { %v464_v31 = vmax.f32 %v410_v27, 0.0  ;;  %v425_v32 = vadd.f32 %v735_v29, %v927_v0  ;;  %505 = vadd.xlane.f32.xlu0 %v485_v28  ;;  %v488_v41 = vmul.f32 %v933_v4, %v465_v30 }
 0x1b8   :  { %v419_v34 = vpop.f32.mrf.mxu1 }
 0x1b9   :  { %v420_v35 = vadd.f32 %v927_v0, %v419_v34  ;;  %507 = vadd.xlane.f32.xlu1 %v486_v33  ;;  %v487_v36 = vmul.f32 %v933_v4, %v464_v31  ;;  %v467_v38 = vmax.f32 %v425_v32, 0.0 }
 0x1ba   :  { %v738_v37 = vpop.f32.mrf.mxu1 }
 0x1bb   :  { %v466_v39 = vmax.f32 %v420_v35, 0.0  ;;  %v435_v40 = vadd.f32 %v738_v37, %v927_v0  ;;  %509 = vadd.xlane.f32.xlu0 %v487_v36  ;;  %v490_v49 = vmul.f32 %v933_v4, %v467_v38 }
 0x1bc   :  { %v429_v42 = vpop.f32.mrf.mxu1 }
 0x1bd   :  { %v430_v43 = vadd.f32 %v927_v0, %v429_v42  ;;  %511 = vadd.xlane.f32.xlu1 %v488_v41  ;;  %v489_v44 = vmul.f32 %v933_v4, %v466_v39  ;;  %v469_v46 = vmax.f32 %v435_v40, 0.0 }
 0x1be   :  { %v741_v45 = vpop.f32.mrf.mxu1 }
 0x1bf   :  { %v468_v47 = vmax.f32 %v430_v43, 0.0  ;;  %v445_v48 = vadd.f32 %v741_v45, %v927_v0  ;;  %513 = vadd.xlane.f32.xlu0 %v489_v44  ;;  %v492_v57 = vmul.f32 %v933_v4, %v469_v46 }
 0x1c0   :  { %v439_v50 = vpop.f32.mrf.mxu1 }
 0x1c1   :  { %v440_v51 = vadd.f32 %v927_v0, %v439_v50  ;;  %515 = vadd.xlane.f32.xlu1 %v490_v49  ;;  %v491_v52 = vmul.f32 %v933_v4, %v468_v47  ;;  %v471_v54 = vmax.f32 %v445_v48, 0.0 }
 0x1c2   :  { %v744_v53 = vpop.f32.mrf.mxu1 }
 0x1c3   :  { %v470_v55 = vmax.f32 %v440_v51, 0.0  ;;  %v455_v56 = vadd.f32 %v744_v53, %v927_v0  ;;  %517 = vadd.xlane.f32.xlu0 %v491_v52  ;;  %v494_v63 = vmul.f32 %v933_v4, %v471_v54 }
 0x1c4   :  { %v449_v58 = vpop.f32.mrf.mxu1 }
 0x1c5   :  { %v450_v59 = vadd.f32 %v927_v0, %v449_v58  ;;  %519 = vadd.xlane.f32.xlu1 %v492_v57  ;;  %v493_v60 = vmul.f32 %v933_v4, %v470_v55  ;;  %v473_v61 = vmax.f32 %v455_v56, 0.0 }
 0x1c7   :  { %v472_v62 = vmax.f32 %v450_v59, 0.0  ;;  %521 = vadd.xlane.f32.xlu0 %v493_v60  ;;  %v496_v2 = vmul.f32 %v933_v4, %v473_v61 }
 0x1c9   :  { %523 = vadd.xlane.f32.xlu1 %v494_v63  ;;  %v495_v1 = vmul.f32 %v933_v4, %v472_v62 }
 0x1cb   :  { %525 = vadd.xlane.f32.xlu0 %v495_v1 }
 0x1cd   :  { %527 = vadd.xlane.f32.xlu1 %v496_v2 }
 0x236   :  { %v500_v0 = vpop.xlane.xlu0 %499 }
 0x237   :  { %v532_v5 = vadd.f32 %v530_v3, %v500_v0 }
 0x239   :  { %548 = vst [vmem:[%s1023_s6 + $0x8] sm:$0xff] %v532_v5 }
 0x23a   :  { %v498_v6 = vpop.xlane.xlu0 %497  ;;  %v504_v7 = vpop.xlane.xlu1 %503 }
 0x23b   :  { %v531_v8 = vadd.f32 %v530_v3, %v498_v6  ;;  %v534_v9 = vadd.f32 %v530_v3, %v504_v7 }
 0x23d   :  { %547 = vst [vmem:[%s1023_s6] sm:$0xff] %v531_v8  ;;  %550 = vst [vmem:[%s1023_s6 + $0x18] sm:$0xff] %v534_v9 }
 0x23e   :  { %v502_v4 = vpop.xlane.xlu1 %501 }
 0x23f   :  { %v533_v10 = vadd.f32 %v530_v3, %v502_v4 }
 0x240   :  { %v506_v11 = vpop.xlane.xlu0 %505 }
 0x241   :  { %549 = vst [vmem:[%s1023_s6 + $0x10] sm:$0xff] %v533_v10  ;;  %v535_v12 = vadd.f32 %v530_v3, %v506_v11 }
 0x242   :  { %v508_v13 = vpop.xlane.xlu1 %507 }
 0x243   :  { %551 = vst [vmem:[%s1023_s6 + $0x20] sm:$0xff] %v535_v12  ;;  %v536_v14 = vadd.f32 %v530_v3, %v508_v13 }
 0x244   :  { %v510_v15 = vpop.xlane.xlu0 %509 }
 0x245   :  { %552 = vst [vmem:[%s1023_s6 + $0x28] sm:$0xff] %v536_v14  ;;  %v537_v16 = vadd.f32 %v530_v3, %v510_v15 }
 0x246   :  { %v512_v17 = vpop.xlane.xlu1 %511 }
 0x247   :  { %553 = vst [vmem:[%s1023_s6 + $0x30] sm:$0xff] %v537_v16  ;;  %v538_v18 = vadd.f32 %v530_v3, %v512_v17 }
 0x248   :  { %v514_v19 = vpop.xlane.xlu0 %513 }
 0x249   :  { %554 = vst [vmem:[%s1023_s6 + $0x38] sm:$0xff] %v538_v18  ;;  %v539_v20 = vadd.f32 %v530_v3, %v514_v19 }
 0x24a   :  { %v516_v21 = vpop.xlane.xlu1 %515 }
 0x24b   :  { %555 = vst [vmem:[%s1023_s6 + $0x40] sm:$0xff] %v539_v20  ;;  %v540_v22 = vadd.f32 %v530_v3, %v516_v21 }
 0x24c   :  { %v518_v23 = vpop.xlane.xlu0 %517 }
 0x24d   :  { %556 = vst [vmem:[%s1023_s6 + $0x48] sm:$0xff] %v540_v22  ;;  %v541_v24 = vadd.f32 %v530_v3, %v518_v23 }
 0x24e   :  { %v520_v25 = vpop.xlane.xlu1 %519 }
 0x24f   :  { %557 = vst [vmem:[%s1023_s6 + $0x50] sm:$0xff] %v541_v24  ;;  %v542_v26 = vadd.f32 %v530_v3, %v520_v25 }
 0x250   :  { %v522_v27 = vpop.xlane.xlu0 %521 }
 0x251   :  { %558 = vst [vmem:[%s1023_s6 + $0x58] sm:$0xff] %v542_v26  ;;  %v543_v28 = vadd.f32 %v530_v3, %v522_v27 }
 0x252   :  { %v524_v29 = vpop.xlane.xlu1 %523 }
 0x253   :  { %559 = vst [vmem:[%s1023_s6 + $0x60] sm:$0xff] %v543_v28  ;;  %v544_v30 = vadd.f32 %v530_v3, %v524_v29 }
 0x254   :  { %v526_v31 = vpop.xlane.xlu0 %525 }
 0x255   :  { %560 = vst [vmem:[%s1023_s6 + $0x68] sm:$0xff] %v544_v30  ;;  %v545_v32 = vadd.f32 %v530_v3, %v526_v31 }
 0x256   :  { %v528_v33 = vpop.xlane.xlu1 %527 }
 0x257   :  { %561 = vst [vmem:[%s1023_s6 + $0x70] sm:$0xff] %v545_v32  ;;  %v546_v34 = vadd.f32 %v530_v3, %v528_v33 }
 0x259   :  { %562 = vst [vmem:[%s1023_s6 + $0x78] sm:$0xff] %v546_v34 }

</bundles_post_ra>
